<compile_context>
chip_gen: v5e
topology: v5e:2x2
jax: 0.10.0
libtpu: 0.0.40
codegen_flags: <defaults>
</compile_context>

<pallas_src>
import functools

import jax
import jax.numpy as jnp
from jax.experimental import pallas as pl
from jax.experimental.pallas import tpu as pltpu


def _dwconv_kernel(x_ref, dww_ref, dwb_ref, pww_ref, pwb_ref, o_ref, *, cin):
    # x_ref  : (H+2, W*Cin) f32   -- whole H-padded image of this batch item
    # dww_ref: (9, W*Cin)   f32   -- depthwise 3x3 weights (BN1-folded,
    #                                W-boundary masks pre-folded in), W-tiled
    # dwb_ref: (1, W*Cin)   f32   -- depthwise bias (BN1-folded), W-tiled
    # pww_ref: (W*Cin, W*Cout) bf16 -- block-diag pointwise weights (BN2-folded)
    # pwb_ref: (1, W*Cout)  f32   -- pointwise bias (BN2-folded), W-tiled
    # o_ref  : (TH, W*Cout) f32
    th, _ = o_ref.shape
    wcin = x_ref.shape[1]

    h = pl.program_id(1)
    row0 = pl.multiple_of(h * th, th)
    # TH output rows + one halo row above/below (input is pre-padded in H).
    win = x_ref[pl.ds(row0, th + 2), :]                       # (TH+2, W*Cin)

    # kx taps: shift by one pixel == rotate the lane axis by Cin.  The roll
    # wrap-around at the W boundary is zeroed via the weights (folded in the
    # wrapper), so no iota/compare/select is needed here (pure XLU rotation).
    left = pltpu.roll(win, shift=cin, axis=1)                  # in[w-1]
    right = pltpu.roll(win, shift=wcin - cin, axis=1)          # in[w+1]
    taps_x = (left, win, right)

    # Depthwise 3x3 (+ folded BN1) on the VPU, then (inplace) ReLU.
    # (bf16 tap math would be viable on v6e/v7x only; kept f32 for v5e.)
    dww = dww_ref[...]
    acc = jnp.zeros((th, wcin), jnp.float32)
    for ky in range(3):
        for kx in range(3):
            k = 3 * ky + kx
            acc = acc + taps_x[kx][ky:ky + th, :] * dww[k:k + 1, :]
    act = jnp.maximum(acc + dwb_ref[...], 0.0)

    # Pointwise 1x1 conv (+ folded BN2) as one lane-dense block-diagonal
    # matmul on the MXU: bf16 operands, f32 accumulation.  M = TH (=H here).
    pw = jnp.dot(act.astype(jnp.bfloat16), pww_ref[...],
                 preferred_element_type=jnp.float32)
    o_ref[...] = jnp.maximum(pw + pwb_ref[...], 0.0).astype(o_ref.dtype)


def depthwise_conv_forward(x_nhwc, params, *, tile_h=None):
    """DepthWiseConv forward. x_nhwc: (N, H, W, Cin); returns (N, H, W, Cout)."""
    dw_w, dw_b, pw_w, pw_b = params            # BN already folded (eval mode)
    n, hh, ww, cin = x_nhwc.shape
    cout = pw_w.shape[1]
    # Default: one grid step per batch item (whole image per step).
    th = hh if tile_h is None else min(tile_h, hh)
    assert hh % th == 0, "H must be divisible by the H tile"

    wcin, wcout = ww * cin, ww * cout

    # Pack channels into the lane axis: (N, H, W, C) -> (N, H, W*C); pad H by
    # one zero row on each side so every H tile has its halo available.
    xp = jnp.pad(x_nhwc.astype(jnp.float32), ((0, 0), (1, 1), (0, 0), (0, 0)))
    xp = xp.reshape(n, hh + 2, wcin)

    # Weights in the packed layout; W-boundary masks folded into the kx=0 and
    # kx=2 depthwise rows (exact 0/1, so edge behavior is bit-identical).
    dww = jnp.tile(dw_w.reshape(9, 1, cin), (1, ww, 1)).reshape(9, wcin)
    lane = jnp.arange(wcin, dtype=jnp.int32)
    left_edge = (lane >= cin).astype(jnp.float32)          # zero w=0 block
    right_edge = (lane < wcin - cin).astype(jnp.float32)   # zero w=W-1 block
    kx_idx = jnp.arange(9, dtype=jnp.int32) % 3
    edge_mask = jnp.where((kx_idx == 0)[:, None], left_edge[None, :],
                          jnp.where((kx_idx == 2)[:, None],
                                    right_edge[None, :], 1.0))
    dww = dww * edge_mask

    dwb = jnp.tile(dw_b.reshape(1, 1, cin), (1, ww, 1)).reshape(1, wcin)
    pww = jnp.kron(jnp.eye(ww, dtype=pw_w.dtype), pw_w).astype(jnp.bfloat16)
    pwb = jnp.tile(pw_b.reshape(1, 1, cout), (1, ww, 1)).reshape(1, wcout)

    kernel = functools.partial(_dwconv_kernel, cin=cin)
    out = pl.pallas_call(
        kernel,
        out_shape=jax.ShapeDtypeStruct((n, hh, wcout), jnp.float32),
        grid=(n, hh // th),
        in_specs=[
            # per-batch padded image stays resident across the H-tile axis
            pl.BlockSpec((None, hh + 2, wcin), lambda i, j: (i, 0, 0)),
            pl.BlockSpec((9, wcin), lambda i, j: (0, 0)),
            pl.BlockSpec((1, wcin), lambda i, j: (0, 0)),
            pl.BlockSpec((wcin, wcout), lambda i, j: (0, 0)),
            pl.BlockSpec((1, wcout), lambda i, j: (0, 0)),
        ],
        out_specs=pl.BlockSpec((None, th, wcout), lambda i, j: (i, j, 0)),
        compiler_params=pltpu.CompilerParams(
            dimension_semantics=("parallel", "parallel")),
    )(xp, dww, dwb, pww, pwb)
    return out.reshape(n, hh, ww, cout)


def depthwise_conv_ref(x_nhwc, params):
    """Pure-JAX reference (mirrors the kernel's bf16 pointwise operands)."""
    dw_w, dw_b, pw_w, pw_b = params
    n, hh, ww, cin = x_nhwc.shape
    x = x_nhwc.astype(jnp.float32)
    xp = jnp.pad(x, ((0, 0), (1, 1), (1, 1), (0, 0)))
    acc = jnp.zeros_like(x)
    for ky in range(3):
        for kx in range(3):
            acc = acc + xp[:, ky:ky + hh, kx:kx + ww, :] * dw_w[ky, kx]
    act = jnp.maximum(acc + dw_b, 0.0)
    pw = jnp.einsum('nhwi,io->nhwo', act.astype(jnp.bfloat16),
                    pw_w.astype(jnp.bfloat16),
                    preferred_element_type=jnp.float32)
    return jnp.maximum(pw + pw_b, 0.0)


def init_params(key, cin, cout):
    """Deterministic synthetic parameters; eval-mode BN folded into the convs."""
    keys = iter(jax.random.split(key, 16))

    def nrm(shape, s=0.1):
        return s * jax.random.normal(next(keys), shape, jnp.float32)

    def bn_affine(c):
        gamma = 1.0 + nrm((c,))
        beta = nrm((c,))
        mean = nrm((c,))
        var = 1.0 + 0.5 * jax.random.uniform(next(keys), (c,), jnp.float32)
        scale = gamma / jnp.sqrt(var + 1e-5)
        return scale, beta - mean * scale

    dw_w = nrm((3, 3, cin), 0.3)      # == torch depth_conv.weight[c, 0, ky, kx]
    dw_b = nrm((cin,))
    s1, b1 = bn_affine(cin)
    pw_w = nrm((cin, cout), 0.3)      # == torch point_conv.weight[co, ci, 0, 0].T
    pw_b = nrm((cout,))
    s2, b2 = bn_affine(cout)

    dw_w_eff = dw_w * s1              # fold BN1 into the depthwise conv
    dw_b_eff = s1 * dw_b + b1
    pw_w_eff = pw_w * s2[None, :]     # fold BN2 into the pointwise conv
    pw_b_eff = s2 * pw_b + b2
    return [dw_w_eff, dw_b_eff, pw_w_eff, pw_b_eff]


if __name__ == "__main__":
    cin, cout = 16, 32
    n, hh, ww = 2, 16, 16
    key = jax.random.PRNGKey(0)
    kx_, kp = jax.random.split(key)
    # NHWC (lane-friendly) layout; call sites holding NCHW transpose once outside.
    x = jax.random.normal(kx_, (n, hh, ww, cin), jnp.float32)
    params = init_params(kp, cin, cout)

    fwd = jax.jit(depthwise_conv_forward)
    out = fwd(x, params)
    jax.block_until_ready(out)

    ref = depthwise_conv_ref(x, params)
    assert out.shape == (n, hh, ww, cout)
    assert bool(jnp.all(jnp.isfinite(out)))
    assert bool(jnp.allclose(out, ref, atol=1e-3, rtol=1e-3)), \
        float(jnp.max(jnp.abs(out - ref)))
    print("KERNEL_OK")
</pallas_src>

<mosaic_0001>
module attributes {stable_mosaic.version = 11 : i64} {
  func.func @_dwconv_kernel(%arg0: i32, %arg1: i32, %arg2: memref<1x18x256xf32, #tpu.memory_space<vmem>>, %arg3: memref<9x256xf32, #tpu.memory_space<vmem>>, %arg4: memref<1x256xf32, #tpu.memory_space<vmem>>, %arg5: memref<256x512xbf16, #tpu.memory_space<vmem>>, %arg6: memref<1x512xf32, #tpu.memory_space<vmem>>, %arg7: memref<1x16x512xf32, #tpu.memory_space<vmem>>) attributes {dimension_semantics = [#tpu.dimension_semantics<parallel>, #tpu.dimension_semantics<parallel>], iteration_bounds = array<i64: 2, 1>, scalar_prefetch = 0 : i64, scratch_operands = 0 : i64, tpu.core_type = #tpu.core_type<tc>, window_params = [{transform_indices = @transform_0, window_bounds = array<i64: 1, 18, 256>}, {pipeline_mode = #tpu.pipeline_mode<synchronous>, transform_indices = @transform_1, window_bounds = array<i64: 9, 256>}, {pipeline_mode = #tpu.pipeline_mode<synchronous>, transform_indices = @transform_2, window_bounds = array<i64: 1, 256>}, {pipeline_mode = #tpu.pipeline_mode<synchronous>, transform_indices = @transform_3, window_bounds = array<i64: 256, 512>}, {pipeline_mode = #tpu.pipeline_mode<synchronous>, transform_indices = @transform_4, window_bounds = array<i64: 1, 512>}, {transform_indices = @transform_5, window_bounds = array<i64: 1, 16, 512>}]} {
    %c16_i32 = arith.constant 16 : i32
    %0 = arith.muli %arg1, %c16_i32 : i32
    %1 = tpu.assume_multiple %0, 16 : i32
    %c0 = arith.constant 0 : index
    %2 = arith.index_cast %1 : i32 to index
    %c0_0 = arith.constant 0 : index
    %3 = vector.load %arg2[%c0, %2, %c0_0] : memref<1x18x256xf32, #tpu.memory_space<vmem>>, vector<1x18x256xf32>
    %4 = vector.shape_cast %3 : vector<1x18x256xf32> to vector<18x256xf32>
    %c16_i32_1 = arith.constant 16 : i32
    %5 = tpu.dynamic_rotate %4 by %c16_i32_1 dim 1 : vector<18x256xf32>, i32 -> vector<18x256xf32>
    %c240_i32 = arith.constant 240 : i32
    %6 = tpu.dynamic_rotate %4 by %c240_i32 dim 1 : vector<18x256xf32>, i32 -> vector<18x256xf32>
    %c0_2 = arith.constant 0 : index
    %c0_3 = arith.constant 0 : index
    %7 = vector.load %arg3[%c0_2, %c0_3] : memref<9x256xf32, #tpu.memory_space<vmem>>, vector<9x256xf32>
    %cst = arith.constant 0.000000e+00 : f32
    %8 = vector.broadcast %cst : f32 to vector<16x256xf32>
    %9 = vector.extract_strided_slice %5 {offsets = [0, 0], sizes = [16, 256], strides = [1, 1]} : vector<18x256xf32> to vector<16x256xf32>
    %10 = vector.extract_strided_slice %7 {offsets = [0, 0], sizes = [1, 256], strides = [1, 1]} : vector<9x256xf32> to vector<1x256xf32>
    %11 = vector.broadcast %10 : vector<1x256xf32> to vector<16x256xf32>
    %12 = arith.mulf %9, %11 : vector<16x256xf32>
    %13 = arith.addf %8, %12 : vector<16x256xf32>
    %14 = vector.extract_strided_slice %4 {offsets = [0, 0], sizes = [16, 256], strides = [1, 1]} : vector<18x256xf32> to vector<16x256xf32>
    %15 = vector.extract_strided_slice %7 {offsets = [1, 0], sizes = [1, 256], strides = [1, 1]} : vector<9x256xf32> to vector<1x256xf32>
    %16 = vector.broadcast %15 : vector<1x256xf32> to vector<16x256xf32>
    %17 = arith.mulf %14, %16 : vector<16x256xf32>
    %18 = arith.addf %13, %17 : vector<16x256xf32>
    %19 = vector.extract_strided_slice %6 {offsets = [0, 0], sizes = [16, 256], strides = [1, 1]} : vector<18x256xf32> to vector<16x256xf32>
    %20 = vector.extract_strided_slice %7 {offsets = [2, 0], sizes = [1, 256], strides = [1, 1]} : vector<9x256xf32> to vector<1x256xf32>
    %21 = vector.broadcast %20 : vector<1x256xf32> to vector<16x256xf32>
    %22 = arith.mulf %19, %21 : vector<16x256xf32>
    %23 = arith.addf %18, %22 : vector<16x256xf32>
    %24 = vector.extract_strided_slice %5 {offsets = [1, 0], sizes = [16, 256], strides = [1, 1]} : vector<18x256xf32> to vector<16x256xf32>
    %25 = vector.extract_strided_slice %7 {offsets = [3, 0], sizes = [1, 256], strides = [1, 1]} : vector<9x256xf32> to vector<1x256xf32>
    %26 = vector.broadcast %25 : vector<1x256xf32> to vector<16x256xf32>
    %27 = arith.mulf %24, %26 : vector<16x256xf32>
    %28 = arith.addf %23, %27 : vector<16x256xf32>
    %29 = vector.extract_strided_slice %4 {offsets = [1, 0], sizes = [16, 256], strides = [1, 1]} : vector<18x256xf32> to vector<16x256xf32>
    %30 = vector.extract_strided_slice %7 {offsets = [4, 0], sizes = [1, 256], strides = [1, 1]} : vector<9x256xf32> to vector<1x256xf32>
    %31 = vector.broadcast %30 : vector<1x256xf32> to vector<16x256xf32>
    %32 = arith.mulf %29, %31 : vector<16x256xf32>
    %33 = arith.addf %28, %32 : vector<16x256xf32>
    %34 = vector.extract_strided_slice %6 {offsets = [1, 0], sizes = [16, 256], strides = [1, 1]} : vector<18x256xf32> to vector<16x256xf32>
    %35 = vector.extract_strided_slice %7 {offsets = [5, 0], sizes = [1, 256], strides = [1, 1]} : vector<9x256xf32> to vector<1x256xf32>
    %36 = vector.broadcast %35 : vector<1x256xf32> to vector<16x256xf32>
    %37 = arith.mulf %34, %36 : vector<16x256xf32>
    %38 = arith.addf %33, %37 : vector<16x256xf32>
    %39 = vector.extract_strided_slice %5 {offsets = [2, 0], sizes = [16, 256], strides = [1, 1]} : vector<18x256xf32> to vector<16x256xf32>
    %40 = vector.extract_strided_slice %7 {offsets = [6, 0], sizes = [1, 256], strides = [1, 1]} : vector<9x256xf32> to vector<1x256xf32>
    %41 = vector.broadcast %40 : vector<1x256xf32> to vector<16x256xf32>
    %42 = arith.mulf %39, %41 : vector<16x256xf32>
    %43 = arith.addf %38, %42 : vector<16x256xf32>
    %44 = vector.extract_strided_slice %4 {offsets = [2, 0], sizes = [16, 256], strides = [1, 1]} : vector<18x256xf32> to vector<16x256xf32>
    %45 = vector.extract_strided_slice %7 {offsets = [7, 0], sizes = [1, 256], strides = [1, 1]} : vector<9x256xf32> to vector<1x256xf32>
    %46 = vector.broadcast %45 : vector<1x256xf32> to vector<16x256xf32>
    %47 = arith.mulf %44, %46 : vector<16x256xf32>
    %48 = arith.addf %43, %47 : vector<16x256xf32>
    %49 = vector.extract_strided_slice %6 {offsets = [2, 0], sizes = [16, 256], strides = [1, 1]} : vector<18x256xf32> to vector<16x256xf32>
    %50 = vector.extract_strided_slice %7 {offsets = [8, 0], sizes = [1, 256], strides = [1, 1]} : vector<9x256xf32> to vector<1x256xf32>
    %51 = vector.broadcast %50 : vector<1x256xf32> to vector<16x256xf32>
    %52 = arith.mulf %49, %51 : vector<16x256xf32>
    %53 = arith.addf %48, %52 : vector<16x256xf32>
    %c0_4 = arith.constant 0 : index
    %c0_5 = arith.constant 0 : index
    %54 = vector.load %arg4[%c0_4, %c0_5] : memref<1x256xf32, #tpu.memory_space<vmem>>, vector<1x256xf32>
    %55 = vector.broadcast %54 : vector<1x256xf32> to vector<16x256xf32>
    %56 = arith.addf %53, %55 : vector<16x256xf32>
    %cst_6 = arith.constant 0.000000e+00 : f32
    %57 = vector.broadcast %cst_6 : f32 to vector<16x256xf32>
    %58 = arith.maximumf %56, %57 : vector<16x256xf32>
    %59 = arith.truncf %58 : vector<16x256xf32> to vector<16x256xbf16>
    %c0_7 = arith.constant 0 : index
    %c0_8 = arith.constant 0 : index
    %60 = vector.load %arg5[%c0_7, %c0_8] : memref<256x512xbf16, #tpu.memory_space<vmem>>, vector<256x512xbf16>
    %cst_9 = arith.constant dense<0.000000e+00> : vector<16x512xf32>
    %61 = tpu.matmul %59, %60, %cst_9 {dimension_numbers = #tpu.dot_dimension_numbers<[1], [0], [0], [1], [0, 0, 1, 1], [], []>} : vector<16x256xbf16>, vector<256x512xbf16>, vector<16x512xf32> -> vector<16x512xf32>
    %c0_10 = arith.constant 0 : index
    %c0_11 = arith.constant 0 : index
    %62 = vector.load %arg6[%c0_10, %c0_11] : memref<1x512xf32, #tpu.memory_space<vmem>>, vector<1x512xf32>
    %63 = vector.broadcast %62 : vector<1x512xf32> to vector<16x512xf32>
    %64 = arith.addf %61, %63 : vector<16x512xf32>
    %cst_12 = arith.constant 0.000000e+00 : f32
    %65 = vector.broadcast %cst_12 : f32 to vector<16x512xf32>
    %66 = arith.maximumf %64, %65 : vector<16x512xf32>
    %c0_13 = arith.constant 0 : index
    %c0_14 = arith.constant 0 : index
    %c0_15 = arith.constant 0 : index
    %67 = vector.load %arg7[%c0_13, %c0_14, %c0_15] : memref<1x16x512xf32, #tpu.memory_space<vmem>>, vector<1x16x512xf32>
    %68 = vector.shape_cast %67 : vector<1x16x512xf32> to vector<16x512xf32>
    %69 = vector.shape_cast %66 : vector<16x512xf32> to vector<1x16x512xf32>
    tpu.vector_store %arg7[%c0_13, %c0_14, %c0_15], %69 {strides = array<i32>} : memref<1x16x512xf32, #tpu.memory_space<vmem>>, vector<1x16x512xf32>,
    return
  }
  func.func @transform_0(%arg0: i32, %arg1: i32) -> (i32, i32, i32) {
    %c0_i32 = arith.constant 0 : i32
    %c0_i32_0 = arith.constant 0 : i32
    %c0_i32_1 = arith.constant 0 : i32
    return %arg0, %c0_i32, %c0_i32_0 : i32, i32, i32
  }
  func.func @transform_1(%arg0: i32, %arg1: i32) -> (i32, i32) {
    %c0_i32 = arith.constant 0 : i32
    %c0_i32_0 = arith.constant 0 : i32
    %c0_i32_1 = arith.constant 0 : i32
    return %c0_i32, %c0_i32_0 : i32, i32
  }
  func.func @transform_2(%arg0: i32, %arg1: i32) -> (i32, i32) {
    %c0_i32 = arith.constant 0 : i32
    %c0_i32_0 = arith.constant 0 : i32
    %c0_i32_1 = arith.constant 0 : i32
    return %c0_i32, %c0_i32_0 : i32, i32
  }
  func.func @transform_3(%arg0: i32, %arg1: i32) -> (i32, i32) {
    %c0_i32 = arith.constant 0 : i32
    %c0_i32_0 = arith.constant 0 : i32
    %c0_i32_1 = arith.constant 0 : i32
    return %c0_i32, %c0_i32_0 : i32, i32
  }
  func.func @transform_4(%arg0: i32, %arg1: i32) -> (i32, i32) {
    %c0_i32 = arith.constant 0 : i32
    %c0_i32_0 = arith.constant 0 : i32
    %c0_i32_1 = arith.constant 0 : i32
    return %c0_i32, %c0_i32_0 : i32, i32
  }
  func.func @transform_5(%arg0: i32, %arg1: i32) -> (i32, i32, i32) {
    %c0_i32 = arith.constant 0 : i32
    %c0_i32_0 = arith.constant 0 : i32
    return %arg0, %arg1, %c0_i32 : i32, i32, i32
  }
}

</mosaic_0001>

<bundles_post_ra>
// kernel: tile.15
= control target key start
LH: loop header
LB: loop body
LE: loop exit
PB: predicated region body
PF: predicated region fallthrough
CT: control target
= control target key end

     0   :  { %s81_s6 = smov 3  ;;  %s36_s9 = smov 3  ;;  %vm41_vm0 = vcmask 1043458   ;;  %vm46_vm1 = vcmask 1045508   ;;  %vm51_vm2 = vcmask 1047558   ;;  %vm4_vm3 = vcmask 1047556   ;;  %s878_s0 = inlined_call_operand.vmem [shape: f32[9,16,1,1,16], index: 0, kind: input, shape index: {}]   ;;  %s879_s1 = inlined_call_operand.vmem [shape: f32[9,256], index: 1, kind: output, shape index: {}]  }
   0x1   :  { %v426_v0 = vld [vmem:[%s878_s0 + $0x87] ss:$8 sm:%s81_s6]   ;;  %s39_s10 = smov 12  ;;  %s501_s11 = smov 112   ;;  %vm6_vm4 = vcmask 130048   ;;  %vm55_vm5 = vcmask 1048448  }
   0x2   :  { %83 = vrot.lane.b32.xlu1 %v426_v0, %s501_s11  ;;  %v417_v1 = vld [vmem:[%s878_s0 + $0x7] ss:$16 sm:%s36_s9]   ;;  %s44_s14 = smov 48  ;;  %s49_s15 = smov 192  ;;  %vm108_vm6 = vcmask 917248   ;;  %vm161_vm7 = vcmask 786048  }
   0x3   :  { %v418_v2 = vld [vmem:[%s878_s0 + $0x7] ss:$16 sm:%s39_s10]   ;;  %s89_s20 = smov 3  ;;  %s92_s21 = smov 12  ;;  %vm214_vm8 = vcmask 654848   ;;  %vm267_vm9 = vcmask 523648  }
   0x4   :  { %v419_v3 = vld [vmem:[%s878_s0 + $0x7] ss:$16 sm:%s44_s14]   ;;  %v42_v4 = vsel %vm41_vm0, %v418_v2, %v417_v1  ;;  %v428_v6 = vld [vmem:[%s878_s0 + $0x6] ss:$16 sm:%s89_s20]   ;;  %s97_s26 = smov 48  ;;  %s102_s27 = smov 192 }
   0x5   :  { %v420_v5 = vld [vmem:[%s878_s0 + $0x7] ss:$16 sm:%s49_s15]   ;;  %v47_v7 = vsel %vm46_vm1, %v419_v3, %v42_v4  ;;  %v429_v8 = vld [vmem:[%s878_s0 + $0x6] ss:$16 sm:%s92_s21]   ;;  %s58_s3 = smov 3  ;;  %s61_s8 = smov 12 }
   0x6   :  { %v430_v9 = vld [vmem:[%s878_s0 + $0x6] ss:$16 sm:%s97_s26]   ;;  %v52_v10 = vsel %vm51_vm2, %v420_v5, %v47_v7  ;;  %v95_v11 = vsel %vm41_vm0, %v429_v8, %v428_v6  ;;  %v421_v13 = vld [vmem:[%s878_s0 + $0xf] ss:$16 sm:%s58_s3]   ;;  %s66_s9 = smov 48  ;;  %s71_s13 = smov 192 }
   0x7   :  { %v431_v12 = vld [vmem:[%s878_s0 + $0x6] ss:$16 sm:%s102_s27]   ;;  %53 = vrot.lane.b32.xlu0 %v52_v10, %s501_s11  ;;  %v100_v14 = vsel %vm46_vm1, %v430_v9, %v95_v11  ;;  %s164_s18 = smov 3  ;;  %s167_s19 = smov 12  ;;  %vm320_vm10 = vcmask 392448   ;;  %vm373_vm11 = vcmask 261248  }
   0x8   :  { %v422_v15 = vld [vmem:[%s878_s0 + $0xf] ss:$16 sm:%s61_s8]   ;;  %v105_v16 = vsel %vm51_vm2, %v431_v12, %v100_v14  ;;  %v443_v21 = vld [vmem:[%s878_s0 + $0xd] ss:$16 sm:%s164_s18]   ;;  %s172_s24 = smov 48  ;;  %s177_s25 = smov 192 }
   0x9   :  { %v64_v17 = vsel %vm41_vm0, %v422_v15, %v421_v13  ;;  %v423_v18 = vld [vmem:[%s878_s0 + $0xf] ss:$16 sm:%s66_s9]   ;;  %v444_v22 = vld [vmem:[%s878_s0 + $0xd] ss:$16 sm:%s167_s19]   ;;  %s502_s26 = smov 96   ;;  %s142_s29 = smov 3 }
   0xa   :  { %v424_v19 = vld [vmem:[%s878_s0 + $0xf] ss:$16 sm:%s71_s13]   ;;  %v69_v20 = vsel %vm46_vm1, %v423_v18, %v64_v17  ;;  %106 = vrot.lane.b32.xlu1 %v105_v16, %s502_s26  ;;  %v170_v23 = vsel %vm41_vm0, %v444_v22, %v443_v21  ;;  %s145_s30 = smov 12  ;;  %s150_s4 = smov 48 }
   0xb   :  { %v445_v24 = vld [vmem:[%s878_s0 + $0xd] ss:$16 sm:%s172_s24]   ;;  %v439_v25 = vld [vmem:[%s878_s0 + $0x5] ss:$16 sm:%s142_s29]   ;;  %v74_v26 = vsel %vm51_vm2, %v424_v19, %v69_v20  ;;  %s111_s9 = smov 3  ;;  %s114_s10 = smov 12 }
   0xc   :  { %v175_v27 = vsel %vm46_vm1, %v445_v24, %v170_v23  ;;  %v446_v28 = vld [vmem:[%s878_s0 + $0xd] ss:$16 sm:%s177_s25]   ;;  %v440_v29 = vld [vmem:[%s878_s0 + $0x5] ss:$16 sm:%s145_s30]   ;;  %s119_s16 = smov 48  ;;  %s124_s17 = smov 192 }
   0xd   :  { %v441_v30 = vld [vmem:[%s878_s0 + $0x5] ss:$16 sm:%s150_s4]   ;;  %v432_v31 = vld [vmem:[%s878_s0 + $0xe] ss:$16 sm:%s111_s9]   ;;  %v148_v32 = vsel %vm41_vm0, %v440_v29, %v439_v25  ;;  %s155_s18 = smov 192  ;;  %s217_s23 = smov 3  ;;  %v180_v35 = vsel %vm51_vm2, %v446_v28, %v175_v27 }
   0xe   :  { %v433_v33 = vld [vmem:[%s878_s0 + $0xe] ss:$16 sm:%s114_s10]   ;;  %s220_s25 = smov 12  ;;  %s225_s27 = smov 48  ;;  %v454_v39 = vld [vmem:[%s878_s0 + $0xc] ss:$16 sm:%s217_s23]   ;;  %v153_v41 = vsel %vm46_vm1, %v441_v30, %v148_v32 }
   0xf   :  { %v434_v34 = vld [vmem:[%s878_s0 + $0xe] ss:$16 sm:%s119_s16]   ;;  %75 = vrot.lane.b32.xlu0 %v74_v26, %s501_s11  ;;  %v117_v36 = vsel %vm41_vm0, %v433_v33, %v432_v31  ;;  %s195_s3 = smov 3  ;;  %s230_s8 = smov 192 }
  0x10   :  { %v435_v37 = vld [vmem:[%s878_s0 + $0xe] ss:$16 sm:%s124_s17]   ;;  %v122_v38 = vsel %vm46_vm1, %v434_v34, %v117_v36  ;;  %v455_v40 = vld [vmem:[%s878_s0 + $0xc] ss:$16 sm:%s220_s25]   ;;  %s198_s9 = smov 12  ;;  %s503_s10 = smov 80  }
  0x11   :  { %v442_v42 = vld [vmem:[%s878_s0 + $0x5] ss:$16 sm:%s155_s18]   ;;  %v127_v43 = vsel %vm51_vm2, %v435_v37, %v122_v38  ;;  %v223_v44 = vsel %vm41_vm0, %v455_v40, %v454_v39  ;;  %v456_v45 = vld [vmem:[%s878_s0 + $0xc] ss:$16 sm:%s225_s27]   ;;  %s203_s12 = smov 48  ;;  %s270_s17 = smov 3 }
  0x12   :  { %181 = vrot.lane.b32.xlu1 %v180_v35, %s503_s10  ;;  %128 = vrot.lane.b32.xlu2 %v127_v43, %s502_s26  ;;  %v450_v46 = vld [vmem:[%s878_s0 + $0x4] ss:$16 sm:%s195_s3]   ;;  %v158_v48 = vsel %vm51_vm2, %v442_v42, %v153_v41  ;;  %v228_v49 = vsel %vm46_vm1, %v456_v45, %v223_v44  ;;  %s134_s20 = smov 3  ;;  %s273_s21 = smov 12 }
  0x13   :  { %v451_v47 = vld [vmem:[%s878_s0 + $0x4] ss:$16 sm:%s198_s9]   ;;  %v457_v50 = vld [vmem:[%s878_s0 + $0xc] ss:$16 sm:%s230_s8]   ;;  %s208_s11 = smov 192  ;;  %s278_s29 = smov 48 }
  0x14   :  { %v452_v51 = vld [vmem:[%s878_s0 + $0x4] ss:$16 sm:%s203_s12]   ;;  %v201_v52 = vsel %vm41_vm0, %v451_v47, %v450_v46  ;;  %v465_v53 = vld [vmem:[%s878_s0 + $0xb] ss:$16 sm:%s270_s17]   ;;  %v233_v55 = vsel %vm51_vm2, %v457_v50, %v228_v49  ;;  %s248_s3 = smov 3  ;;  %s251_s4 = smov 12 }
  0x15   :  { %v466_v54 = vld [vmem:[%s878_s0 + $0xb] ss:$16 sm:%s273_s21]   ;;  %v437_v56 = vld [vmem:[%s878_s0 + $0x86] ss:$8 sm:%s134_s20]   ;;  %v206_v57 = vsel %vm46_vm1, %v452_v51, %v201_v52  ;;  %s283_s9 = smov 192  ;;  %s504_s12 = smov 64  }
  0x16   :  { %v453_v58 = vld [vmem:[%s878_s0 + $0x4] ss:$16 sm:%s208_s11]   ;;  %v276_v59 = vsel %vm41_vm0, %v466_v54, %v465_v53  ;;  %v467_v60 = vld [vmem:[%s878_s0 + $0xb] ss:$16 sm:%s278_s29]   ;;  %s323_s17 = smov 3  ;;  %s326_s18 = smov 12 }
  0x17   :  { %159 = vrot.lane.b32.xlu0 %v158_v48, %s503_s10  ;;  %v461_v61 = vld [vmem:[%s878_s0 + $0x3] ss:$16 sm:%s248_s3]   ;;  %v211_v63 = vsel %vm51_vm2, %v453_v58, %v206_v57  ;;  %v281_v0 = vsel %vm46_vm1, %v467_v60, %v276_v59  ;;  %s187_s21 = smov 3  ;;  %s261_s11 = smov 192 }
  0x18   :  { %v462_v62 = vld [vmem:[%s878_s0 + $0x3] ss:$16 sm:%s251_s4]   ;;  %v468_v1 = vld [vmem:[%s878_s0 + $0xb] ss:$16 sm:%s283_s9]   ;;  %s331_s29 = smov 48  ;;  %s301_s3 = smov 3 }
  0x19   :  { %v254_v3 = vsel %vm41_vm0, %v462_v62, %v461_v61  ;;  %v476_v4 = vld [vmem:[%s878_s0 + $0xa] ss:$16 sm:%s323_s17]   ;;  %v286_v6 = vsel %vm51_vm2, %v468_v1, %v281_v0  ;;  %v448_v7 = vld [vmem:[%s878_s0 + $0x85] ss:$8 sm:%s187_s21]   ;;  %s304_s4 = smov 12  ;;  %s336_s9 = smov 192 }
  0x1a   :  { %234 = vrot.lane.b32.xlu1 %v233_v55, %s504_s12  ;;  %136 = vrot.lane.b32.xlu2 %v437_v56, %s502_s26  ;;  %s256_s26 = smov 48  ;;  %v477_v5 = vld [vmem:[%s878_s0 + $0xa] ss:$16 sm:%s326_s18]   ;;  %s376_s17 = smov 3 }
  0x1b   :  { %v463_v2 = vld [vmem:[%s878_s0 + $0x3] ss:$16 sm:%s256_s26]   ;;  %v329_v10 = vsel %vm41_vm0, %v477_v5, %v476_v4  ;;  %v478_v11 = vld [vmem:[%s878_s0 + $0xa] ss:$16 sm:%s331_s29]   ;;  %s505_s26 = smov 48   ;;  %s379_s18 = smov 12 }
  0x1c   :  { %v259_v8 = vsel %vm46_vm1, %v463_v2, %v254_v3  ;;  %v464_v9 = vld [vmem:[%s878_s0 + $0x3] ss:$16 sm:%s261_s11]   ;;  %v472_v12 = vld [vmem:[%s878_s0 + $0x2] ss:$16 sm:%s301_s3]   ;;  %v334_v15 = vsel %vm46_vm1, %v478_v11, %v329_v10  ;;  %s240_s21 = smov 3  ;;  %s314_s11 = smov 192 }
  0x1d   :  { %v473_v13 = vld [vmem:[%s878_s0 + $0x2] ss:$16 sm:%s304_s4]   ;;  %v264_v14 = vsel %vm51_vm2, %v464_v9, %v259_v8  ;;  %v479_v16 = vld [vmem:[%s878_s0 + $0xa] ss:$16 sm:%s336_s9]   ;;  %s384_s29 = smov 48  ;;  %s354_s3 = smov 3 }
  0x1e   :  { %v307_v18 = vsel %vm41_vm0, %v473_v13, %v472_v12  ;;  %v487_v19 = vld [vmem:[%s878_s0 + $0x9] ss:$16 sm:%s376_s17]   ;;  %v339_v21 = vsel %vm51_vm2, %v479_v16, %v334_v15  ;;  %v459_v22 = vld [vmem:[%s878_s0 + $0x84] ss:$8 sm:%s240_s21]   ;;  %s357_s4 = smov 12  ;;  %s389_s9 = smov 192 }
  0x1f   :  { %212 = vrot.lane.b32.xlu0 %v211_v63, %s504_s12  ;;  %v488_v20 = vld [vmem:[%s878_s0 + $0x9] ss:$16 sm:%s379_s18]   ;;  %s362_s16 = smov 48  ;;  %s293_s19 = smov 3 }
  0x20   :  { %v475_v24 = vld [vmem:[%s878_s0 + $0x2] ss:$16 sm:%s314_s11]   ;;  %v382_v25 = vsel %vm41_vm0, %v488_v20, %v487_v19  ;;  %v489_v26 = vld [vmem:[%s878_s0 + $0x9] ss:$16 sm:%s384_s29]   ;;  %s367_s22 = smov 192  ;;  %s507_s27 = smov 16  }
  0x21   :  { %v483_v27 = vld [vmem:[%s878_s0 + $0x1] ss:$16 sm:%s354_s3]   ;;  %v387_v30 = vsel %vm46_vm1, %v489_v26, %v382_v25  ;;  %v490_v31 = vld [vmem:[%s878_s0 + $0x9] ss:$16 sm:%s389_s9]   ;;  %s399_s30 = smov 3  ;;  %s30_s21 = smov 3 }
  0x22   :  { %287 = vrot.lane.b32.xlu1 %v286_v6, %s505_s26  ;;  %189 = vrot.lane.b32.xlu2 %v448_v7, %s503_s10  ;;  %s309_s10 = smov 48  ;;  %v484_v28 = vld [vmem:[%s878_s0 + $0x1] ss:$16 sm:%s357_s4]   ;;  %v392_v34 = vsel %vm51_vm2, %v490_v31, %v387_v30 }
  0x23   :  { %v474_v17 = vld [vmem:[%s878_s0 + $0x2] ss:$16 sm:%s309_s10]   ;;  %s506_s10 = smov 32   ;;  %v360_v32 = vsel %vm41_vm0, %v484_v28, %v483_v27  ;;  %v485_v33 = vld [vmem:[%s878_s0 + $0x1] ss:$16 sm:%s362_s16]  }
  0x24   :  { %v312_v23 = vsel %vm46_vm1, %v474_v17, %v307_v18  ;;  %v470_v35 = vld [vmem:[%s878_s0 + $0x83] ss:$8 sm:%s293_s19]   ;;  %v365_v36 = vsel %vm46_vm1, %v485_v33, %v360_v32  ;;  %v486_v37 = vld [vmem:[%s878_s0 + $0x1] ss:$16 sm:%s367_s22]  }
  0x25   :  { %v317_v29 = vsel %vm51_vm2, %v475_v24, %v312_v23  ;;  %v370_v38 = vsel %vm51_vm2, %v486_v37, %v365_v36  ;;  %v492_v40 = vld [vmem:[%s878_s0 + $0x81] ss:$8 sm:%s399_s30]   ;;  %v2_v41 = vld [vmem:[%s878_s0] ss:$8 sm:$0xf]  }
  0x26   :  { %v3_v42 = vld [vmem:[%s878_s0] ss:$8 sm:$0xf0]  }
  0x27   :  { %265 = vrot.lane.b32.xlu0 %v264_v14, %s505_s26  ;;  %v5_v43 = vsel %vm4_vm3, %v3_v42, %v2_v41  ;;  %v409_v44 = vld [vmem:[%s878_s0 + $0x40] ss:$8 sm:$0xf]  }
  0x28   :  { %v410_v45 = vld [vmem:[%s878_s0 + $0x40] ss:$8 sm:$0xf0]   ;;  %7 = vst.msk [vmem:[%s879_s1] ss:$8 sm:$0x3] %vm6_vm4, %v5_v43  }
  0x29   :  { %406 = vst.msk [vmem:[%s879_s1 - $0xf] ss:$8 sm:$0xc] %vm6_vm4, %v5_v43   ;;  %v19_v46 = vsel %vm4_vm3, %v410_v45, %v409_v44  ;;  %v415_v47 = vld [vmem:[%s878_s0 + $0x80] ss:$8 sm:%s30_s21]  }
  0x2a   :  { %340 = vrot.lane.b32.xlu1 %v339_v21, %s506_s10  ;;  %242 = vrot.lane.b32.xlu2 %v459_v22, %s504_s12  ;;  %407 = vst.msk [vmem:[%s879_s1 - $0x1e] ss:$8 sm:$0x30] %vm6_vm4, %v5_v43  }
  0x2b   :  { %408 = vst.msk [vmem:[%s879_s1 - $0x2d] ss:$8 sm:$0xc0] %vm6_vm4, %v5_v43  }
  0x2c   :  { %411 = vst.msk [vmem:[%s879_s1 + $0x4] ss:$8 sm:$0x3] %vm6_vm4, %v19_v46  }
  0x2d   :  { %412 = vst.msk [vmem:[%s879_s1 - $0xb] ss:$8 sm:$0xc] %vm6_vm4, %v19_v46  }
  0x2e   :  { %413 = vst.msk [vmem:[%s879_s1 - $0x1a] ss:$8 sm:$0x30] %vm6_vm4, %v19_v46  }
  0x2f   :  { %318 = vrot.lane.b32.xlu0 %v317_v29, %s506_s10  ;;  %414 = vst.msk [vmem:[%s879_s1 - $0x29] ss:$8 sm:$0xc0] %vm6_vm4, %v19_v46  }
  0x30   :  { %416 = vst.msk [vmem:[%s879_s1 + $0x10] ss:$8 sm:$0x3] %vm6_vm4, %v415_v47  }
  0x32   :  { %393 = vrot.lane.b32.xlu1 %v392_v34, %s507_s27  ;;  %295 = vrot.lane.b32.xlu2 %v470_v35, %s505_s26  ;;  %s346_s26 = smov 3 }
  0x33   :  { %v481_v39 = vld [vmem:[%s878_s0 + $0x82] ss:$8 sm:%s346_s26]  }
  0x37   :  { %371 = vrot.lane.b32.xlu0 %v370_v38, %s507_s27 }
  0x3a   :  { %348 = vrot.lane.b32.xlu2 %v481_v39, %s506_s10 }
  0x42   :  { %401 = vrot.lane.b32.xlu2 %v492_v40, %s507_s27 }
  0x6c   :  { %v129_v48 = vpop.permute.xlu2 %128  }
  0x74   :  { %v84_v49 = vpop.permute.xlu1 %83   ;;  %v137_v50 = vpop.permute.xlu2 %136  }
  0x75   :  { %427 = vst.msk [vmem:[%s879_s1 + $0x10] ss:$8 sm:$0x3] %vm55_vm5, %v84_v49  }
  0x76   :  { %438 = vst.msk [vmem:[%s879_s1 + $0x10] ss:$8 sm:$0x3] %vm108_vm6, %v137_v50  }
  0x79   :  { %v54_v51 = vpop.permute.xlu0 %53  }
  0x7a   :  { %56 = vst.msk [vmem:[%s879_s1] sm:$0xff] %vm55_vm5, %v54_v51  }
  0x7c   :  { %v107_v52 = vpop.permute.xlu1 %106   ;;  %v190_v53 = vpop.permute.xlu2 %189  }
  0x7d   :  { %109 = vst.msk [vmem:[%s879_s1] sm:$0xff] %vm108_vm6, %v107_v52  }
  0x7e   :  { %449 = vst.msk [vmem:[%s879_s1 + $0x10] ss:$8 sm:$0x3] %vm161_vm7, %v190_v53  }
  0x81   :  { %v76_v54 = vpop.permute.xlu0 %75  }
  0x82   :  { %425 = vst.msk [vmem:[%s879_s1 + $0x8] sm:$0xff] %vm55_vm5, %v76_v54  }
  0x83   :  { %436 = vst.msk [vmem:[%s879_s1 + $0x8] sm:$0xff] %vm108_vm6, %v129_v48  }
  0x84   :  { %v182_v55 = vpop.permute.xlu1 %181   ;;  %v243_v56 = vpop.permute.xlu2 %242  }
  0x85   :  { %447 = vst.msk [vmem:[%s879_s1 + $0x8] sm:$0xff] %vm161_vm7, %v182_v55  }
  0x86   :  { %460 = vst.msk [vmem:[%s879_s1 + $0x10] ss:$8 sm:$0x3] %vm214_vm8, %v243_v56  }
  0x89   :  { %v160_v57 = vpop.permute.xlu0 %159  }
  0x8a   :  { %162 = vst.msk [vmem:[%s879_s1] sm:$0xff] %vm161_vm7, %v160_v57  }
  0x8c   :  { %v235_v58 = vpop.permute.xlu1 %234   ;;  %v296_v59 = vpop.permute.xlu2 %295  }
  0x8d   :  { %458 = vst.msk [vmem:[%s879_s1 + $0x8] sm:$0xff] %vm214_vm8, %v235_v58  }
  0x8e   :  { %471 = vst.msk [vmem:[%s879_s1 + $0x10] ss:$8 sm:$0x3] %vm267_vm9, %v296_v59  }
  0x91   :  { %v213_v60 = vpop.permute.xlu0 %212  }
  0x92   :  { %215 = vst.msk [vmem:[%s879_s1] sm:$0xff] %vm214_vm8, %v213_v60  }
  0x94   :  { %v288_v61 = vpop.permute.xlu1 %287   ;;  %v349_v62 = vpop.permute.xlu2 %348  }
  0x95   :  { %469 = vst.msk [vmem:[%s879_s1 + $0x8] sm:$0xff] %vm267_vm9, %v288_v61  }
  0x96   :  { %482 = vst.msk [vmem:[%s879_s1 + $0x10] ss:$8 sm:$0x3] %vm320_vm10, %v349_v62  }
  0x99   :  { %v266_v63 = vpop.permute.xlu0 %265  }
  0x9a   :  { %268 = vst.msk [vmem:[%s879_s1] sm:$0xff] %vm267_vm9, %v266_v63  }
  0x9c   :  { %v341_v0 = vpop.permute.xlu1 %340   ;;  %v402_v1 = vpop.permute.xlu2 %401  }
  0x9d   :  { %480 = vst.msk [vmem:[%s879_s1 + $0x8] sm:$0xff] %vm320_vm10, %v341_v0  }
  0x9e   :  { %493 = vst.msk [vmem:[%s879_s1 + $0x10] ss:$8 sm:$0x3] %vm373_vm11, %v402_v1  }
  0xa1   :  { %v319_v2 = vpop.permute.xlu0 %318  }
  0xa2   :  { %321 = vst.msk [vmem:[%s879_s1] sm:$0xff] %vm320_vm10, %v319_v2  }
  0xa4   :  { %v394_v3 = vpop.permute.xlu1 %393  }
  0xa5   :  { %491 = vst.msk [vmem:[%s879_s1 + $0x8] sm:$0xff] %vm373_vm11, %v394_v3  }
  0xa9   :  { %v372_v4 = vpop.permute.xlu0 %371  }
  0xaa   :  { %374 = vst.msk [vmem:[%s879_s1] sm:$0xff] %vm373_vm11, %v372_v4  }

// kernel: depthwise_conv_forward.1
= control target key start
LH: loop header
LB: loop body
LE: loop exit
PB: predicated region body
PF: predicated region fallthrough
CT: control target
= control target key end

     0   :  { %s1573_s18 = smov 0   ;;  %s1575_s19 = smov 0   ;;  %s2437_s0 = inlined_call_operand.vmem [shape: f32[2,18,256], index: 0, kind: input, shape index: {}]   ;;  %s2438_s1 = inlined_call_operand.vmem [shape: f32[9,256], index: 1, kind: input, shape index: {}]   ;;  %s2439_s2 = inlined_call_operand.vmem [shape: f32[1,256], index: 2, kind: input, shape index: {}]   ;;  %s2440_s3 = inlined_call_operand.vmem [shape: bf16[256,512], index: 3, kind: input, shape index: {}]   ;;  %s2441_s4 = inlined_call_operand.vmem [shape: f32[1,512], index: 4, kind: input, shape index: {}]   ;;  %s2442_s5 = inlined_call_operand.vmem [shape: f32[2,16,512], index: 5, kind: output, shape index: {}]  }
   0x1   :  { %s1577_s20 = smov 0  }
   0x2 LB: > { %s27_s21 = sadd.s32 1, %s1535_s19  ;;  %p1161_p0 = scmp.ge.s32.totalorder %s1539_s20, 1  ;;  %s1539_s20 = sphi %s1577_s20, %s15_s20   ;;  %s1535_s19 = sphi %s1575_s19, %s2448_s19   ;;  %s1531_s18 = sphi %s1573_s18, %s2447_s18  }
   0x3   : > { %p29_p1 = scmp.ge.s32.totalorder %s27_s21, 2  ;;  %p201_p2 = scmp.lt.s32.totalorder %s1539_s20, 3 }
   0x5   : > { %s2450_s21 = smov (%p29_p1, %s27_s21), 0  ;;  %p202_p3 = pnand %p1161_p0, %p201_p2 }
   0x6   : > { %p234_p4 = scmp.lt.s32.totalorder (!%p202_p3), %s1531_s18, 1  ;;  %s1541_s26 = smov (!%p202_p3), 16  }
   0x7   : > { %205 = sbr.rel (%p202_p3) target bundleno = 343 (0x157), region = 40  ;;  %s1542_s27 = smov (!%p202_p3), 112  }
   0xc   : > { %s2452_s18 = smov (!%p234_p4, %s1531_s18), 1  ;;  %v1279_v6 = vld [vmem:[%s2440_s3 + $0xe0] sm:$0xf]  ;;  %v1454_v7 = vld [vmem:[%s2440_s3 + $0xec] sm:$0xf0]  ;;  %v1672_v29 = vld [vmem:[%s2438_s1 + $0x8] sm:$0xff]  ;;  %v274_v49 = vlaneseq }
   0xd   : > { %s1488_s22 = smul.u32 48, %s2452_s18  ;;  %v1280_v8 = vor.u32 %v1454_v7, %v1279_v6  ;;  %v1407_v9 = vld [vmem:[%s2440_s3 + $0x1e0] sm:$0xf]  ;;  %v1486_v10 = vld [vmem:[%s2440_s3 + $0x1ec] sm:$0xf0]  ;;  %v1680_v32 = vperm.slane %v1672_v29, 4 }
   0xe   : > { %v1452_v11 = vld [vmem:[%s2440_s3 + $0xe4] sm:$0xf]  ;;  %v1408_v12 = vor.u32 %v1486_v10, %v1407_v9  ;;  %v1281_v13 = vld [vmem:[%s2440_s3 + $0xf0] sm:$0xf0]  ;;  %v1263_v18 = vld [vmem:[%s2440_s3 + $0xc0] sm:$0xf] }
   0xf   : > { %s238_s25 = scalar_lea.vmem %s2437_s0, %s1488_s22  ;;  %v1484_v14 = vld [vmem:[%s2440_s3 + $0x1e4] sm:$0xf]  ;;  %v1409_v15 = vld [vmem:[%s2440_s3 + $0x1f0] sm:$0xf0]  ;;  %940 = vmatpush.bf16.msra.mxu0 %v1280_v8  ;;  %v1284_v16 = vor.u32 %v1452_v11, %v1281_v13  ;;  %v1450_v19 = vld [vmem:[%s2440_s3 + $0xcc] sm:$0xf0] }
  0x10   : > { %v1597_v0 = vld [vmem:[%s238_s25 + $0x8] sm:$0xff]  ;;  %v1599_v1 = vld [vmem:[%s238_s25] sm:$0xff]  ;;  %v1606_v3 = vld [vmem:[%s238_s25 + $0x18] sm:$0xff]  ;;  %v1412_v17 = vor.u32 %v1484_v14, %v1409_v15  ;;  %954 = vmatpush.bf16.msra.mxu1 %v1408_v12  ;;  %v1264_v21 = vor.u32 %v1450_v19, %v1263_v18  ;;  %v1683_v33 = vperm.slane %v1672_v29, 7  ;;  %v1766_v10 = vand.u32 127, %v274_v49  ;;  %s1423_s23 = sshll.u32 %s2452_s18, 6 }
  0x11   : > { %268 = vrot.lane.b32.xlu1 %v1597_v0, %s1541_s26  ;;  %262 = vrot.lane.b32.xlu0 %v1599_v1, %s1541_s26  ;;  %v1603_v2 = vld [vmem:[%s238_s25 + $0x20] sm:$0x3]  ;;  %v1608_v4 = vld [vmem:[%s238_s25 + $0x10] sm:$0xff]  ;;  %v1719_v48 = vmul.f32 %v1680_v32, %v1597_v0  ;;  %v1735_v54 = vmul.f32 %v1680_v32, %v1606_v3  ;;  %vm447_vm1 = vcmask 1045504   ;;  %vm350_vm2 = vcmask 1046528  }
  0x12   : > { %266 = vrot.lane.b32.xlu2 %v1603_v2, %s1541_s26  ;;  %v1610_v5 = vld [vmem:[%s238_s25 + $0x28] sm:$0x3]  ;;  %v1391_v20 = vld [vmem:[%s2440_s3 + $0x1c0] sm:$0xf]  ;;  %v1482_v22 = vld [vmem:[%s2440_s3 + $0x1cc] sm:$0xf0]  ;;  %968 = vmatpush.bf16.msra.mxu2 %v1284_v16  ;;  %v1723_v51 = vmul.f32 %v1683_v33, %v1597_v0  ;;  %v1764_v9 = vmul.f32 %v1683_v33, %v1606_v3 }
  0x13   : > { %v1448_v23 = vld [vmem:[%s2440_s3 + $0xc4] sm:$0xf]  ;;  %v1265_v24 = vld [vmem:[%s2440_s3 + $0xd0] sm:$0xf0]  ;;  %982 = vmatpush.bf16.msra.mxu3 %v1412_v17  ;;  %v1392_v25 = vor.u32 %v1482_v22, %v1391_v20  ;;  %941 = vmatpush.bf16.msra.mxu0 %v1264_v21  ;;  %v1247_v37 = vld [vmem:[%s2440_s3 + $0xa0] sm:$0xf] }
  0x14   : > { %v1268_v26 = vor.u32 %v1448_v23, %v1265_v24  ;;  %v1480_v27 = vld [vmem:[%s2440_s3 + $0x1c4] sm:$0xf]  ;;  %v1393_v28 = vld [vmem:[%s2440_s3 + $0x1d0] sm:$0xf0]  ;;  %v1446_v38 = vld [vmem:[%s2440_s3 + $0xac] sm:$0xf0] }
  0x15   : > { %v1677_v30 = vld [vmem:[%s2438_s1] sm:$0xff]  ;;  %v1396_v31 = vor.u32 %v1480_v27, %v1393_v28  ;;  %955 = vmatpush.bf16.msra.mxu1 %v1392_v25  ;;  %v1248_v40 = vor.u32 %v1446_v38, %v1247_v37  ;;  %v1478_v41 = vld [vmem:[%s2440_s3 + $0x1ac] sm:$0xf0]  ;;  %v1249_v43 = vld [vmem:[%s2440_s3 + $0xb0] sm:$0xf0]  ;;  %v386_v8 = vrot.slane %v1719_v48, 1 }
  0x16   : > { %v1686_v34 = vperm.slane %v1677_v30, 4  ;;  %v1689_v35 = vperm.slane %v1677_v30, 7  ;;  %v1375_v39 = vld [vmem:[%s2440_s3 + $0x1a0] sm:$0xf]  ;;  %969 = vmatpush.bf16.msra.mxu2 %v1268_v26  ;;  %v1444_v42 = vld [vmem:[%s2440_s3 + $0xa4] sm:$0xf] }
  0x17   : > { %983 = vmatpush.bf16.msra.mxu3 %v1396_v31  ;;  %v1376_v44 = vor.u32 %v1478_v41, %v1375_v39  ;;  %v1252_v45 = vor.u32 %v1444_v42, %v1249_v43  ;;  %v1476_v46 = vld [vmem:[%s2440_s3 + $0x1a4] sm:$0xf]  ;;  %v1377_v47 = vld [vmem:[%s2440_s3 + $0x1b0] sm:$0xf0]  ;;  %942 = vmatpush.bf16.msra.mxu0 %v1248_v40  ;;  %v1231_v55 = vld [vmem:[%s2440_s3 + $0x80] sm:$0xf]  ;;  %v1814_v39 = vmul.f32 %v1680_v32, %v1610_v5 }
  0x18   : > { %v1380_v50 = vor.u32 %v1476_v46, %v1377_v47  ;;  %v1727_v52 = vmul.f32 %v1686_v34, %v1599_v1  ;;  %v1731_v53 = vmul.f32 %v1689_v35, %v1599_v1  ;;  %v1442_v56 = vld [vmem:[%s2440_s3 + $0x8c] sm:$0xf0]  ;;  %v1359_v57 = vld [vmem:[%s2440_s3 + $0x180] sm:$0xf]  ;;  %v1440_v60 = vld [vmem:[%s2440_s3 + $0x84] sm:$0xf]  ;;  %v1786_v20 = vmul.f32 %v1686_v34, %v1608_v4 }
  0x19   : > { %270 = vrot.lane.b32.xlu1 %v1606_v3, %s1541_s26  ;;  %264 = vrot.lane.b32.xlu0 %v1608_v4, %s1541_s26  ;;  %v1232_v58 = vor.u32 %v1442_v56, %v1231_v55  ;;  %v1474_v59 = vld [vmem:[%s2440_s3 + $0x18c] sm:$0xf0]  ;;  %v1233_v61 = vld [vmem:[%s2440_s3 + $0x90] sm:$0xf0]  ;;  %v483_v12 = vrot.slane %v1723_v51, 2  ;;  %v387_v15 = vrot.slane %v1735_v54, 1  ;;  %v1790_v21 = vmul.f32 %v1689_v35, %v1608_v4 }
  0x1a   : > { %272 = vrot.lane.b32.xlu2 %v1610_v5, %s1541_s26  ;;  %956 = vmatpush.bf16.msra.mxu1 %v1376_v44  ;;  %v1360_v62 = vor.u32 %v1474_v59, %v1359_v57  ;;  %v1236_v63 = vor.u32 %v1440_v60, %v1233_v61  ;;  %v1472_v6 = vld [vmem:[%s2440_s3 + $0x184] sm:$0xf]  ;;  %v1361_v7 = vld [vmem:[%s2440_s3 + $0x190] sm:$0xf0]  ;;  %v383_v13 = vrot.slane %v1727_v52, 1  ;;  %v480_v14 = vrot.slane %v1731_v53, 2  ;;  %s2418_s26 = scalar_lea.vmem %s2442_s5, %s1423_s23 }
  0x1b   : > { %970 = vmatpush.bf16.msra.mxu2 %v1252_v45  ;;  %984 = vmatpush.bf16.msra.mxu3 %v1380_v50  ;;  %v1364_v11 = vor.u32 %v1472_v6, %v1361_v7  ;;  %v1215_v16 = vld [vmem:[%s2440_s3 + $0x60] sm:$0xf]  ;;  %v1438_v17 = vld [vmem:[%s2440_s3 + $0x6c] sm:$0xf0]  ;;  %v1436_v25 = vld [vmem:[%s2440_s3 + $0x64] sm:$0xf]  ;;  %v1804_v31 = vmul.f32 %v1686_v34, %v1603_v2  ;;  %v472_v37 = vmul.f32 %v1689_v35, %v1603_v2 }
  0x1c   : > { %943 = vmatpush.bf16.msra.mxu0 %v1232_v58  ;;  %v1343_v18 = vld [vmem:[%s2440_s3 + $0x160] sm:$0xf]  ;;  %v1470_v19 = vld [vmem:[%s2440_s3 + $0x16c] sm:$0xf0]  ;;  %v1216_v23 = vor.u32 %v1438_v17, %v1215_v16  ;;  %v1217_v26 = vld [vmem:[%s2440_s3 + $0x70] sm:$0xf0]  ;;  %v473_v32 = vmul.f32 %v1683_v33, %v1610_v5 }
  0x1d   : > { %v1344_v24 = vor.u32 %v1470_v19, %v1343_v18  ;;  %v1468_v27 = vld [vmem:[%s2440_s3 + $0x164] sm:$0xf]  ;;  %v484_v28 = vrot.slane %v1764_v9, 2  ;;  %vm276_vm0 = vcmp.lt.s32.totalorder %v1766_v10, 16  ;;  %v1345_v38 = vld [vmem:[%s2440_s3 + $0x170] sm:$0xf0]  ;;  %v1220_v40 = vor.u32 %v1436_v25, %v1217_v26 }
  0x1e   : > { %957 = vmatpush.bf16.msra.mxu1 %v1360_v62  ;;  %v1348_v41 = vor.u32 %v1468_v27, %v1345_v38  ;;  %v1199_v34 = vld [vmem:[%s2440_s3 + $0x40] sm:$0xf]  ;;  %v1466_v45 = vld [vmem:[%s2440_s3 + $0x14c] sm:$0xf0]  ;;  %v1432_v46 = vld [vmem:[%s2440_s3 + $0x44] sm:$0xf] }
  0x1f   : > { %971 = vmatpush.bf16.msra.mxu2 %v1236_v63  ;;  %985 = vmatpush.bf16.msra.mxu3 %v1364_v11  ;;  %v1327_v35 = vld [vmem:[%s2440_s3 + $0x140] sm:$0xf]  ;;  %v1843_v33 = vperm.slane %v1677_v30, 3  ;;  %v1846_v47 = vperm.slane %v1672_v29, 3  ;;  %v1464_v50 = vld [vmem:[%s2440_s3 + $0x144] sm:$0xf] }
  0x20   : > { %944 = vmatpush.bf16.msra.mxu0 %v1216_v23  ;;  %v1329_v55 = vld [vmem:[%s2440_s3 + $0x150] sm:$0xf0]  ;;  %v384_v56 = vrot.slane %v1786_v20, 1  ;;  %v481_v57 = vrot.slane %v1790_v21, 2  ;;  %v389_v58 = vrot.slane %v1804_v31, 1  ;;  %v486_v60 = vrot.slane %v472_v37, 2 }
  0x21   : > { %285 = vrot.lane.b32.xlu1 %v1608_v4, %s1542_s27  ;;  %283 = vrot.lane.b32.xlu0 %v1599_v1, %s1542_s27  ;;  %v1332_v59 = vor.u32 %v1464_v50, %v1329_v55  ;;  %v391_v61 = vrot.slane %v1814_v39, 1  ;;  %v488_v6 = vrot.slane %v473_v32, 2  ;;  %v306_v7 = vperm.slane %v1677_v30, 0  ;;  %v1460_v55 = vld [vmem:[%s2440_s3 + $0x124] sm:$0xf] }
  0x22   : > { %289 = vrot.lane.b32.xlu2 %v1597_v0, %s1542_s27  ;;  %958 = vmatpush.bf16.msra.mxu1 %v1344_v24  ;;  %v307_v11 = vperm.slane %v1672_v29, 0  ;;  %v316_v16 = vperm.slane %v1677_v30, 1  ;;  %v317_v17 = vperm.slane %v1672_v29, 1  ;;  %v1869_v18 = vperm.slane %v1677_v30, 6  ;;  %v1456_v23 = vld [vmem:[%s2440_s3 + $0x104] sm:$0xf] }
  0x23   : > { %972 = vmatpush.bf16.msra.mxu2 %v1220_v40  ;;  %986 = vmatpush.bf16.msra.mxu3 %v1348_v41  ;;  %v1872_v19 = vperm.slane %v1672_v29, 6  ;;  %v1877_v24 = vperm.slane %v1677_v30, 5  ;;  %v1880_v25 = vperm.slane %v1672_v29, 5  ;;  %v1893_v40 = vsel %vm447_vm1, %v481_v57, %v486_v60  ;;  %v1287_v52 = vld [vmem:[%s2440_s3 + $0xe8] sm:$0xf] }
  0x24   : > { %v1898_v41 = vsel %vm447_vm1, %v484_v28, %v488_v6  ;;  %vm295_vm3 = vcmp.lt.s32.totalorder %v1766_v10, 112  ;;  %v1992_v48 = vsel %vm350_vm2, %v383_v13, %v384_v56  ;;  %v1455_v13 = vld [vmem:[%s2440_s3 + $0xf4] sm:$0xf0]  ;;  %v2015_v20 = vsel %vm350_vm2, %v387_v15, %v391_v61  ;;  %v1453_v9 = vld [vmem:[%s2440_s3 + $0xec] sm:$0xf] }
  0x25   : > { %v2022_v31 = vsel %vm447_vm1, %v483_v12, %v484_v28  ;;  %v1487_v54 = vld [vmem:[%s2440_s3 + $0x1f4] sm:$0xf0]  ;;  %v1289_v61 = vld [vmem:[%s2440_s3 + $0xf8] sm:$0xf0]  ;;  %v2110_v21 = vld [vmem:[%s2438_s1 + $0x10] ss:$0 sm:$0xff] }
  0x27   : > { %987 = vmatpush.bf16.msra.mxu3 %v1332_v59  ;;  %v1313_v59 = vld [vmem:[%s2440_s3 + $0x130] sm:$0xf0] }
  0x29   : > { %287 = vrot.lane.b32.xlu1 %v1603_v2, %s1542_s27  ;;  %291 = vrot.lane.b32.xlu0 %v1606_v3, %s1542_s27  ;;  %v1434_v2 = vld [vmem:[%s2440_s3 + $0x4c] sm:$0xf0] }
  0x2a   : > { %293 = vrot.lane.b32.xlu2 %v1610_v5, %s1542_s27  ;;  %v1200_v44 = vor.u32 %v1434_v2, %v1199_v34  ;;  %v1201_v5 = vld [vmem:[%s2440_s3 + $0x50] sm:$0xf0]  ;;  %v1183_v34 = vld [vmem:[%s2440_s3 + $0x20] sm:$0xf]  ;;  %v1430_v2 = vld [vmem:[%s2440_s3 + $0x2c] sm:$0xf0] }
  0x2b   : > { %v1204_v49 = vor.u32 %v1432_v46, %v1201_v5  ;;  %v1184_v46 = vor.u32 %v1430_v2, %v1183_v34  ;;  %v1462_v5 = vld [vmem:[%s2440_s3 + $0x12c] sm:$0xf0] }
  0x2c   : > { %945 = vmatpush.bf16.msra.mxu0 %v1200_v44  ;;  %v318_v44 = vmul.f32 %v316_v16, %v1599_v1 }
  0x2d   : > { %973 = vmatpush.bf16.msra.mxu2 %v1204_v49 }
  0x30   : > { %946 = vmatpush.bf16.msra.mxu0 %v1184_v46  ;;  %v1295_v46 = vld [vmem:[%s2440_s3 + $0x100] sm:$0xf] }
  0x6c   : > { %v1691_v36 = vpop.permute.xlu2 %266 }
  0x74   : > { %v273_v22 = vpop.permute.xlu2 %272 }
  0x75   : > { %v279_v42 = vsel %vm276_vm0, %v1691_v36, %v273_v22  ;;  %v282_v43 = vsel %vm276_vm0, %v273_v22, %v1691_v36  ;;  %v1328_v36 = vor.u32 %v1466_v45, %v1327_v35  ;;  %v326_v22 = vperm.slane %v1677_v30, 2  ;;  %v1311_v35 = vld [vmem:[%s2440_s3 + $0x120] sm:$0xf]  ;;  %v1337_v30 = vld [vmem:[%s2440_s3 + $0x158] sm:$0xf0] }
  0x76   : > { %v1859_v62 = vmul.f32 %v1843_v33, %v282_v43  ;;  %v1862_v63 = vmul.f32 %v1846_v47, %v279_v42  ;;  %v1885_v37 = vmul.f32 %v1869_v18, %v282_v43  ;;  %v1888_v38 = vmul.f32 %v1872_v19, %v279_v42 }
  0x77   : > { %959 = vmatpush.bf16.msra.mxu1 %v1328_v36  ;;  %v1910_v42 = vmul.f32 %v317_v17, %v1597_v0  ;;  %v1914_v45 = vmul.f32 %v316_v16, %v1608_v4  ;;  %v1428_v36 = vld [vmem:[%s2440_s3 + $0x24] sm:$0xf]  ;;  %v1185_v0 = vld [vmem:[%s2440_s3 + $0x30] sm:$0xf0]  ;;  %v1312_v4 = vor.u32 %v1462_v5, %v1311_v35  ;;  %v1426_v5 = vld [vmem:[%s2440_s3 + $0xc] sm:$0xf0] }
  0x78   : > { %v357_v26 = vrot.slane %v1859_v62, 1  ;;  %v359_v27 = vrot.slane %v1862_v63, 1  ;;  %v1188_v50 = vor.u32 %v1428_v36, %v1185_v0 }
  0x7a   : > { %974 = vmatpush.bf16.msra.mxu2 %v1188_v50  ;;  %v1963_v50 = vmul.f32 %v317_v17, %v1606_v3  ;;  %v1169_v17 = vld [vmem:[%s2440_s3 + $0x10] sm:$0xf0] }
  0x7b   : > { %960 = vmatpush.bf16.msra.mxu1 %v1312_v4 }
  0x83   : > { %v269_v32 = vpop.permute.xlu1 %268  ;;  %v263_v43 = vpop.permute.xlu0 %262 }
  0x84   : > { %v277_v49 = vsel %vm276_vm0, %v263_v43, %v269_v32  ;;  %v280_v1 = vsel %vm276_vm0, %v269_v32, %v263_v43  ;;  %v1316_v32 = vor.u32 %v1460_v55, %v1313_v59  ;;  %v1167_v43 = vld [vmem:[%s2440_s3] sm:$0xf]  ;;  %v1458_v55 = vld [vmem:[%s2440_s3 + $0x10c] sm:$0xf0]  ;;  %v1424_v59 = vld [vmem:[%s2440_s3 + $0x4] sm:$0xf] }
  0x85   : > { %v1936_v60 = vmul.f32 %v1843_v33, %v280_v1  ;;  %v1939_v6 = vmul.f32 %v1846_v47, %v277_v49  ;;  %v1944_v2 = vmul.f32 %v1869_v18, %v280_v1  ;;  %v1947_v35 = vmul.f32 %v1872_v19, %v277_v49 }
  0x86   : > { %v308_v36 = vmul.f32 %v306_v7, %v280_v1  ;;  %v1978_v1 = vsel %vm350_vm2, %v386_v8, %v387_v15  ;;  %988 = vmatpush.bf16.msra.mxu3 %v1316_v32  ;;  %v1168_v3 = vor.u32 %v1426_v5, %v1167_v43  ;;  %v1999_v8 = vsel %vm350_vm2, %v384_v56, %v389_v58  ;;  %v1297_v5 = vld [vmem:[%s2440_s3 + $0x110] sm:$0xf0] }
  0x87   : > { %v351_v0 = vrot.slane %v1936_v60, 1  ;;  %v354_v4 = vrot.slane %v1939_v6, 1  ;;  %v448_v34 = vrot.slane %v1944_v2, 2  ;;  %v451_v16 = vrot.slane %v1947_v35, 2  ;;  %v1443_v2 = vld [vmem:[%s2440_s3 + $0x94] sm:$0xf0] }
  0x88   : > { %v1296_v32 = vor.u32 %v1458_v55, %v1295_v46  ;;  %v1172_v43 = vor.u32 %v1424_v59, %v1169_v17  ;;  %947 = vmatpush.bf16.msra.mxu0 %v1168_v3  ;;  %v1300_v56 = vor.u32 %v1456_v23, %v1297_v5  ;;  %v1288_v58 = vor.u32 %v1455_v13, %v1287_v52  ;;  %v1415_v46 = vld [vmem:[%s2440_s3 + $0x1e8] sm:$0xf]  ;;  %v1485_v23 = vld [vmem:[%s2440_s3 + $0x1ec] sm:$0xf]  ;;  %v1417_v55 = vld [vmem:[%s2440_s3 + $0x1f8] sm:$0xf0] }
  0x89   : > { %v309_v51 = vmul.f32 %v307_v11, %v277_v49  ;;  %v2035_v12 = vadd.f32 %v318_v44, %v308_v36  ;;  %v1416_v39 = vor.u32 %v1487_v54, %v1415_v46  ;;  %v1292_v36 = vor.u32 %v1453_v9, %v1289_v61  ;;  %v1271_v59 = vld [vmem:[%s2440_s3 + $0xc8] sm:$0xf]  ;;  %v1451_v3 = vld [vmem:[%s2440_s3 + $0xd4] sm:$0xf0]  ;;  %v1481_v46 = vld [vmem:[%s2440_s3 + $0x1cc] sm:$0xf] }
  0x8a   : > { %961 = vmatpush.bf16.msra.mxu1 %v1296_v32  ;;  %975 = vmatpush.bf16.msra.mxu2 %v1172_v43  ;;  %v1399_v17 = vld [vmem:[%s2440_s3 + $0x1c8] sm:$0xf]  ;;  %v1483_v13 = vld [vmem:[%s2440_s3 + $0x1d4] sm:$0xf0]  ;;  %v1401_v54 = vld [vmem:[%s2440_s3 + $0x1d8] sm:$0xf0] }
  0x8b   : > { %v271_v15 = vpop.permute.xlu1 %270  ;;  %v265_v28 = vpop.permute.xlu0 %264  ;;  %989 = vmatpush.bf16.msra.mxu3 %v1300_v56  ;;  %v1449_v56 = vld [vmem:[%s2440_s3 + $0xcc] sm:$0xf]  ;;  %v1255_v9 = vld [vmem:[%s2440_s3 + $0xa8] sm:$0xf]  ;;  %v1447_v61 = vld [vmem:[%s2440_s3 + $0xb4] sm:$0xf0]  ;;  %v1400_v53 = vor.u32 %v1483_v13, %v1399_v17 }
  0x8c   : > { %v278_v44 = vsel %vm276_vm0, %v265_v28, %v271_v15  ;;  %v281_v49 = vsel %vm276_vm0, %v271_v15, %v265_v28  ;;  %996 = vmatpush.bf16.msrb.mxu0 %v1288_v58  ;;  %v290_v28 = vpop.permute.xlu2 %289  ;;  %v1256_v17 = vor.u32 %v1447_v61, %v1255_v9  ;;  %v2443_v9 = vperm.slane %v1672_v29, 2  ;;  %v1369_v61 = vld [vmem:[%s2440_s3 + $0x198] sm:$0xf0] }
  0x8d   : > { %v310_v32 = vmul.f32 %v306_v7, %v281_v49  ;;  %v311_v43 = vmul.f32 %v307_v11, %v278_v44  ;;  %v340_v5 = vmul.f32 %v1843_v33, %v281_v49  ;;  %v341_v52 = vmul.f32 %v1846_v47, %v278_v44  ;;  %v1273_v7 = vld [vmem:[%s2440_s3 + $0xd8] sm:$0xf0] }
  0x8e   : > { %1010 = vmatpush.bf16.msrb.mxu1 %v1416_v39  ;;  %v2075_v58 = vmul.f32 %v1869_v18, %v281_v49  ;;  %v2078_v33 = vmul.f32 %v1872_v19, %v278_v44  ;;  %1024 = vmatpush.bf16.msrb.mxu2 %v1292_v36  ;;  %v1420_v47 = vor.u32 %v1485_v23, %v1417_v55  ;;  %v1383_v23 = vld [vmem:[%s2440_s3 + $0x1a8] sm:$0xf]  ;;  %v1445_v55 = vld [vmem:[%s2440_s3 + $0xac] sm:$0xf] }
  0x8f   : > { %v1272_v11 = vor.u32 %v1451_v3, %v1271_v59  ;;  %v2090_v18 = vadd.f32 %v1910_v42, %v309_v51  ;;  %v352_v19 = vrot.slane %v340_v5, 1  ;;  %v355_v15 = vrot.slane %v341_v52, 1  ;;  %v1257_v3 = vld [vmem:[%s2440_s3 + $0xb8] sm:$0xf0]  ;;  %v1441_v5 = vld [vmem:[%s2440_s3 + $0x8c] sm:$0xf] }
  0x90   : > { %v2097_v39 = vsel %vm447_vm1, %v480_v14, %v481_v57  ;;  %v449_v42 = vrot.slane %v2075_v58, 2  ;;  %v452_v51 = vrot.slane %v2078_v33, 2  ;;  %1038 = vmatpush.bf16.msrb.mxu3 %v1420_v47  ;;  %v1276_v14 = vor.u32 %v1449_v56, %v1273_v7  ;;  %v1479_v57 = vld [vmem:[%s2440_s3 + $0x1b4] sm:$0xf0]  ;;  %v1241_v47 = vld [vmem:[%s2440_s3 + $0x98] sm:$0xf0] }
  0x91   : > { %997 = vmatpush.bf16.msrb.mxu0 %v1272_v11  ;;  %v2119_v44 = vadd.f32 %v1914_v45, %v310_v32  ;;  %v2122_v49 = vadd.f32 %v1963_v50, %v311_v43  ;;  %v353_v36 = vsel %vm350_vm2, %v351_v0, %v352_v19  ;;  %v356_v59 = vsel %vm350_vm2, %v354_v4, %v355_v15  ;;  %v1477_v45 = vld [vmem:[%s2440_s3 + $0x1ac] sm:$0xf]  ;;  %v1385_v50 = vld [vmem:[%s2440_s3 + $0x1b8] sm:$0xf0]  ;;  %v2156_v0 = vld [vmem:[%s2438_s1 + $0x18] ss:$0 sm:$0xff] }
  0x92   : > { %v2144_v60 = vsel %vm447_vm1, %v448_v34, %v449_v42  ;;  %v2151_v6 = vsel %vm447_vm1, %v451_v16, %v452_v51  ;;  %v2161_v4 = vsel %vm350_vm2, %v352_v19, %v357_v26  ;;  %v2166_v34 = vsel %vm350_vm2, %v355_v15, %v359_v27  ;;  %1011 = vmatpush.bf16.msrb.mxu1 %v1400_v53  ;;  %v1239_v16 = vld [vmem:[%s2440_s3 + $0x88] sm:$0xf]  ;;  %v1475_v43 = vld [vmem:[%s2440_s3 + $0x194] sm:$0xf0]  ;;  %v1473_v11 = vld [vmem:[%s2440_s3 + $0x18c] sm:$0xf] }
  0x93   : > { %v2174_v35 = vpop.permute.xlu1 %285  ;;  %v284_v62 = vpop.permute.xlu0 %283  ;;  %1025 = vmatpush.bf16.msrb.mxu2 %v1276_v14  ;;  %v1404_v26 = vor.u32 %v1481_v46, %v1401_v54  ;;  %v1384_v32 = vor.u32 %v1479_v57, %v1383_v23  ;;  %v1260_v63 = vor.u32 %v1445_v55, %v1257_v3  ;;  %v1367_v27 = vld [vmem:[%s2440_s3 + $0x188] sm:$0xf]  ;;  %v1388_v56 = vor.u32 %v1477_v45, %v1385_v50  ;;  %v2198_v46 = vld [vmem:[%s2439_s2] sm:$0x3]  ;;  %v1439_v53 = vld [vmem:[%s2440_s3 + $0x74] sm:$0xf0] }
  0x94   : > { %v296_v52 = vsel %vm295_vm3, %v284_v62, %v290_v28  ;;  %v299_v13 = vsel %vm295_vm3, %v290_v28, %v284_v62  ;;  %v1240_v7 = vor.u32 %v1443_v2, %v1239_v16  ;;  %v1223_v23 = vld [vmem:[%s2440_s3 + $0x68] sm:$0xf]  ;;  %v1368_v55 = vor.u32 %v1475_v43, %v1367_v27  ;;  %v1471_v50 = vld [vmem:[%s2440_s3 + $0x174] sm:$0xf0] }
  0x95   : > { %v328_v54 = vmul.f32 %v326_v22, %v296_v52  ;;  %v329_v19 = vmul.f32 %v2443_v9, %v299_v13  ;;  %v2205_v15 = vmul.f32 %v1877_v24, %v296_v52  ;;  %v2208_v28 = vmul.f32 %v1880_v25, %v299_v13  ;;  %1039 = vmatpush.bf16.msrb.mxu3 %v1404_v26  ;;  %v1351_v45 = vld [vmem:[%s2440_s3 + $0x168] sm:$0xf]  ;;  %v294_v9 = vpop.permute.xlu2 %293 }
  0x96   : > { %v2220_v14 = vmul.f32 %v2110_v21, %v296_v52  ;;  %v2223_v57 = vmul.f32 %v2156_v0, %v299_v13  ;;  %998 = vmatpush.bf16.msrb.mxu0 %v1256_v17  ;;  %1012 = vmatpush.bf16.msrb.mxu1 %v1384_v32  ;;  %v532_v3 = vperm.slane %v2198_v46, 0  ;;  %v1437_v17 = vld [vmem:[%s2440_s3 + $0x6c] sm:$0xf]  ;;  %v1225_v32 = vld [vmem:[%s2440_s3 + $0x78] sm:$0xf0]  ;;  %v2444_v27 = vrot.slane %v1885_v37, 2 }
  0x97   : > { %v332_v16 = vadd.f32 %v328_v54, %v2035_v12  ;;  %v333_v2 = vadd.f32 %v329_v19, %v2090_v18  ;;  %v415_v62 = vrot.slane %v2205_v15, 1  ;;  %v418_v26 = vrot.slane %v2208_v28, 1  ;;  %1026 = vmatpush.bf16.msrb.mxu2 %v1260_v63  ;;  %v1469_v52 = vld [vmem:[%s2440_s3 + $0x16c] sm:$0xf]  ;;  %v1353_v13 = vld [vmem:[%s2440_s3 + $0x178] sm:$0xf0] }
  0x98   : > { %v2247_v12 = vsel %vm447_vm1, %v449_v42, %v2444_v27  ;;  %v512_v18 = vrot.slane %v2220_v14, 2  ;;  %v515_v43 = vrot.slane %v2223_v57, 2  ;;  %v1244_v63 = vor.u32 %v1441_v5, %v1241_v47  ;;  %v1207_v19 = vld [vmem:[%s2440_s3 + $0x48] sm:$0xf]  ;;  %v1457_v57 = vld [vmem:[%s2440_s3 + $0x10c] sm:$0xf] }
  0x99   : > { %v365_v54 = vadd.f32 %v353_v36, %v332_v16  ;;  %v366_v37 = vadd.f32 %v356_v59, %v333_v2  ;;  %1040 = vmatpush.bf16.msrb.mxu3 %v1388_v56  ;;  %v1372_v58 = vor.u32 %v1473_v11, %v1369_v61  ;;  %v533_v42 = vperm.slane %v2198_v46, 1  ;;  %v1435_v56 = vld [vmem:[%s2440_s3 + $0x54] sm:$0xf0]  ;;  %v1335_v11 = vld [vmem:[%s2440_s3 + $0x148] sm:$0xf] }
  0x9a   : > { %v2445_v5 = vrot.slane %v1888_v38, 2  ;;  %999 = vmatpush.bf16.msrb.mxu0 %v1240_v7  ;;  %1013 = vmatpush.bf16.msrb.mxu1 %v1368_v55  ;;  %v1224_v36 = vor.u32 %v1439_v53, %v1223_v23  ;;  %v1352_v59 = vor.u32 %v1471_v50, %v1351_v45  ;;  %v1467_v38 = vld [vmem:[%s2440_s3 + $0x154] sm:$0xf0]  ;;  %v1228_v23 = vor.u32 %v1437_v17, %v1225_v32  ;;  %v1433_v32 = vld [vmem:[%s2440_s3 + $0x4c] sm:$0xf] }
  0x9b   : > { %v397_v33 = vadd.f32 %v1992_v48, %v365_v54  ;;  %v288_v7 = vpop.permute.xlu1 %287  ;;  %v292_v61 = vpop.permute.xlu0 %291  ;;  %1027 = vmatpush.bf16.msrb.mxu2 %v1244_v63  ;;  %v1356_v53 = vor.u32 %v1469_v52, %v1353_v13  ;;  %v1208_v2 = vor.u32 %v1435_v56, %v1207_v19  ;;  %v1336_v17 = vor.u32 %v1467_v38, %v1335_v11  ;;  %v1209_v13 = vld [vmem:[%s2440_s3 + $0x58] sm:$0xf0]  ;;  %v1465_v54 = vld [vmem:[%s2440_s3 + $0x14c] sm:$0xf]  ;;  %v610_v46 = vld [vmem:[%s2441_s4] sm:$0xf] }
  0x9c   : > { %v2266_v47 = vsel %vm447_vm1, %v452_v51, %v2445_v5  ;;  %v398_v51 = vadd.f32 %v1978_v1, %v366_v37  ;;  %v298_v55 = vsel %vm295_vm3, %v288_v7, %v294_v9  ;;  %v301_v45 = vsel %vm295_vm3, %v294_v9, %v288_v7  ;;  %v1319_v7 = vld [vmem:[%s2440_s3 + $0x128] sm:$0xf] }
  0x9d   : > { %v297_v50 = vsel %vm295_vm3, %v2174_v35, %v292_v61  ;;  %v300_v48 = vsel %vm295_vm3, %v292_v61, %v2174_v35  ;;  %v407_v1 = vmul.f32 %v1877_v24, %v298_v55  ;;  %v408_v16 = vmul.f32 %v1880_v25, %v301_v45  ;;  %1041 = vmatpush.bf16.msrb.mxu3 %v1372_v58 }
  0x9e   : > { %v330_v27 = vmul.f32 %v326_v22, %v297_v50  ;;  %v2446_v63 = vperm.slane %v1672_v29, 2  ;;  %v405_v10 = vmul.f32 %v1877_v24, %v297_v50  ;;  %v406_v35 = vmul.f32 %v1880_v25, %v300_v48  ;;  %1000 = vmatpush.bf16.msrb.mxu0 %v1224_v36  ;;  %1014 = vmatpush.bf16.msrb.mxu1 %v1352_v59  ;;  %v1191_v59 = vld [vmem:[%s2440_s3 + $0x28] sm:$0xf] }
  0x9f   : > { %v421_v22 = vrot.slane %v407_v1, 1  ;;  %v423_v29 = vrot.slane %v408_v16, 1  ;;  %v2310_v37 = vmul.f32 %v2110_v21, %v298_v55  ;;  %v2313_v24 = vmul.f32 %v2156_v0, %v301_v45  ;;  %1028 = vmatpush.bf16.msrb.mxu2 %v1228_v23  ;;  %v1193_v45 = vld [vmem:[%s2440_s3 + $0x38] sm:$0xf0]  ;;  %v1175_v1 = vld [vmem:[%s2440_s3 + $0x8] sm:$0xf] }
  0xa0   : > { %v331_v52 = vmul.f32 %v2446_v63, %v300_v48  ;;  %v334_v25 = vadd.f32 %v330_v27, %v2119_v44  ;;  %v416_v58 = vrot.slane %v405_v10, 1  ;;  %v419_v19 = vrot.slane %v406_v35, 1  ;;  %v1427_v16 = vld [vmem:[%s2440_s3 + $0x14] sm:$0xf0] }
  0xa1   : > { %v2318_v5 = vmul.f32 %v2110_v21, %v297_v50  ;;  %v2321_v36 = vmul.f32 %v2156_v0, %v300_v48  ;;  %1042 = vmatpush.bf16.msrb.mxu3 %v1356_v53  ;;  %v1212_v56 = vor.u32 %v1433_v32, %v1209_v13  ;;  %v1340_v11 = vor.u32 %v1465_v54, %v1337_v30  ;;  %v1431_v0 = vld [vmem:[%s2440_s3 + $0x34] sm:$0xf0]  ;;  %v1321_v48 = vld [vmem:[%s2440_s3 + $0x138] sm:$0xf0]  ;;  %v1303_v32 = vld [vmem:[%s2440_s3 + $0x108] sm:$0xf] }
  0xa2   : > { %v335_v9 = vadd.f32 %v331_v52, %v2122_v49  ;;  %v367_v38 = vadd.f32 %v2161_v4, %v334_v25  ;;  %v417_v49 = vsel %vm350_vm2, %v415_v62, %v416_v58  ;;  %v420_v21 = vsel %vm350_vm2, %v418_v26, %v419_v19  ;;  %1001 = vmatpush.bf16.msrb.mxu0 %v1208_v2  ;;  %v1463_v4 = vld [vmem:[%s2440_s3 + $0x134] sm:$0xf0]  ;;  %v1429_v26 = vld [vmem:[%s2440_s3 + $0x2c] sm:$0xf]  ;;  %v1177_v54 = vld [vmem:[%s2440_s3 + $0x18] sm:$0xf0] }
  0xa3   : > { %v424_v15 = vsel %vm350_vm2, %v419_v19, %v423_v29  ;;  %v429_v28 = vadd.f32 %v417_v49, %v397_v33  ;;  %v430_v62 = vadd.f32 %v420_v21, %v398_v51  ;;  %1015 = vmatpush.bf16.msrb.mxu1 %v1336_v17  ;;  %v513_v53 = vrot.slane %v2318_v5, 2  ;;  %1029 = vmatpush.bf16.msrb.mxu2 %v1212_v56  ;;  %v1461_v33 = vld [vmem:[%s2440_s3 + $0x12c] sm:$0xf]  ;;  %v1459_v27 = vld [vmem:[%s2440_s3 + $0x114] sm:$0xf0] }
  0xa4   : > { %v368_v44 = vadd.f32 %v2166_v34, %v335_v9  ;;  %v422_v34 = vsel %vm350_vm2, %v416_v58, %v421_v22  ;;  %v399_v61 = vadd.f32 %v1999_v8, %v367_v38  ;;  %v516_v55 = vrot.slane %v2321_v36, 2  ;;  %v1425_v13 = vld [vmem:[%s2440_s3 + $0xc] sm:$0xf] }
  0xa5   : > { %v462_v51 = vadd.f32 %v2144_v60, %v429_v28  ;;  %v463_v50 = vadd.f32 %v2151_v6, %v430_v62  ;;  %1043 = vmatpush.bf16.msrb.mxu3 %v1340_v11  ;;  %v1192_v8 = vor.u32 %v1431_v0, %v1191_v59  ;;  %v518_v2 = vrot.slane %v2310_v37, 2 }
  0xa6   : > { %v400_v23 = vadd.f32 %v2015_v20, %v368_v44  ;;  %v1320_v20 = vor.u32 %v1463_v4, %v1319_v7  ;;  %v520_v60 = vrot.slane %v2313_v24, 2  ;;  %v431_v6 = vadd.f32 %v422_v34, %v399_v61 }
  0xa7   : > { %v494_v63 = vadd.f32 %v2097_v39, %v462_v51  ;;  %v495_v52 = vadd.f32 %v2022_v31, %v463_v50  ;;  %v514_v10 = vsel %vm447_vm1, %v512_v18, %v513_v53  ;;  %v517_v35 = vsel %vm447_vm1, %v515_v43, %v516_v55  ;;  %1002 = vmatpush.bf16.msrb.mxu0 %v1192_v8  ;;  %v1305_v43 = vld [vmem:[%s2440_s3 + $0x118] sm:$0xf0] }
  0xa8   : > { %v432_v17 = vadd.f32 %v424_v15, %v400_v23  ;;  %v464_v39 = vadd.f32 %v2247_v12, %v431_v6  ;;  %1016 = vmatpush.bf16.msrb.mxu1 %v1320_v20  ;;  %v1196_v14 = vor.u32 %v1429_v26, %v1193_v45  ;;  %v1324_v18 = vor.u32 %v1461_v33, %v1321_v48 }
  0xa9   : > { %v526_v30 = vadd.f32 %v514_v10, %v494_v63  ;;  %v527_v22 = vadd.f32 %v517_v35, %v495_v52  ;;  %v1176_v29 = vor.u32 %v1427_v16, %v1175_v1  ;;  %v1304_v37 = vor.u32 %v1459_v27, %v1303_v32 }
  0xaa   : > { %v465_v31 = vadd.f32 %v2266_v47, %v432_v17  ;;  %v496_v24 = vadd.f32 %v1893_v40, %v464_v39  ;;  %1030 = vmatpush.bf16.msrb.mxu2 %v1196_v14  ;;  %1044 = vmatpush.bf16.msrb.mxu3 %v1324_v18  ;;  %v1180_v47 = vor.u32 %v1425_v13, %v1177_v54  ;;  %v613_v34 = vperm.slane %v610_v46, 1 }
  0xab   : > { %v519_v25 = vsel %vm447_vm1, %v513_v53, %v518_v2  ;;  %v521_v9 = vsel %vm447_vm1, %v516_v55, %v520_v60  ;;  %1003 = vmatpush.bf16.msrb.mxu0 %v1176_v29  ;;  %v1308_v58 = vor.u32 %v1457_v57, %v1305_v43  ;;  %v536_v36 = vadd.f32 %v532_v3, %v526_v30 }
  0xac   : > { %v497_v12 = vadd.f32 %v1898_v41, %v465_v31  ;;  %v528_v19 = vadd.f32 %v519_v25, %v496_v24  ;;  %v537_v56 = vadd.f32 %v533_v42, %v527_v22  ;;  %1017 = vmatpush.bf16.msrb.mxu1 %v1304_v37  ;;  %v614_v50 = vperm.slane %v610_v46, 2 }
  0xad   : > { %v540_v11 = vmax.f32 %v536_v36, 0.0  ;;  %v615_v32 = vperm.slane %v610_v46, 3 }
  0xae   : > { %v529_v5 = vadd.f32 %v521_v9, %v497_v12  ;;  %v538_v40 = vadd.f32 %v532_v3, %v528_v19  ;;  %1031 = vmatpush.bf16.msrb.mxu2 %v1180_v47  ;;  %1045 = vmatpush.bf16.msrb.mxu3 %v1308_v58  ;;  %v541_v38 = vmax.f32 %v537_v56, 0.0  ;;  %v612_v3 = vperm.slane %v610_v46, 0 }
  0xb0   : > { %v539_v41 = vadd.f32 %v533_v42, %v529_v5  ;;  %v542_v59 = vmax.f32 %v538_v40, 0.0 }
  0xb2   : > { %v543_v44 = vmax.f32 %v539_v41, 0.0  ;;  %v544_v49 = vpack.c.bf16 %v542_v59, %v540_v11 }
  0xb4   : > { %v545_v21 = vpack.c.bf16 %v543_v44, %v541_v38  ;;  %948 = vmatmul.bf16.vlgmr.msra.gmra.mxu0 %v544_v49  ;;  %976 = vmatmul.bf16.vlgmr.msra.gmra.mxu2 %v544_v49 }
  0xb6   : > { %962 = vmatmul.bf16.vlgmr.msra.gmra.mxu1 %v545_v21  ;;  %990 = vmatmul.bf16.vlgmr.msra.gmra.mxu3 %v545_v21 }
  0xc4   : > { %1004 = vmatmul.bf16.vlgmr.msrb.gmra.mxu0 %v544_v49  ;;  %1032 = vmatmul.bf16.vlgmr.msrb.gmra.mxu2 %v544_v49 }
  0xc6   : > { %1018 = vmatmul.bf16.vlgmr.msrb.gmra.mxu1 %v545_v21  ;;  %1046 = vmatmul.bf16.vlgmr.msrb.gmra.mxu3 %v545_v21 }
 0x131   : > { %v949_v42 = vpop.f32.mrf.mxu0 }
 0x132   : > { %v950_v7 = vadd.f32 %v949_v42, %v612_v3 }
 0x133   : > { %v963_v0 = vpop.f32.mrf.mxu1 }
 0x134   : > { %v964_v4 = vadd.f32 %v963_v0, %v950_v7 }
 0x136   : > { %v1052_v15 = vmax.f32 %v964_v4, 0.0 }
 0x137   : > { %v977_v28 = vpop.f32.mrf.mxu2 }
 0x138   : > { %1060 = vst [vmem:[%s2418_s26] sm:$0xff] %v1052_v15  ;;  %v978_v26 = vadd.f32 %v977_v28, %v613_v34 }
 0x139   : > { %v991_v62 = vpop.f32.mrf.mxu3  ;;  %v951_v61 = vpop.f32.mrf.mxu0 }
 0x13a   : > { %v952_v53 = vadd.f32 %v951_v61, %v612_v3  ;;  %v992_v55 = vadd.f32 %v991_v62, %v978_v26 }
 0x13b   : > { %v965_v23 = vpop.f32.mrf.mxu1 }
 0x13c   : > { %v966_v45 = vadd.f32 %v965_v23, %v952_v53  ;;  %v1053_v33 = vmax.f32 %v992_v55, 0.0 }
 0x13e   : > { %v1056_v51 = vmax.f32 %v966_v45, 0.0  ;;  %1061 = vst [vmem:[%s2418_s26 + $0x8] sm:$0xff] %v1053_v33 }
 0x13f   : > { %v979_v8 = vpop.f32.mrf.mxu2 }
 0x140   : > { %1064 = vst [vmem:[%s2418_s26 + $0x20] sm:$0xff] %v1056_v51  ;;  %v980_v48 = vadd.f32 %v979_v8, %v613_v34 }
 0x141   : > { %v993_v20 = vpop.f32.mrf.mxu3  ;;  %v1005_v1 = vpop.f32.mrf.mxu0 }
 0x142   : > { %v1006_v2 = vadd.f32 %v1005_v1, %v614_v50  ;;  %v994_v60 = vadd.f32 %v993_v20, %v980_v48 }
 0x143   : > { %v1019_v16 = vpop.f32.mrf.mxu1 }
 0x144   : > { %v1020_v6 = vadd.f32 %v1019_v16, %v1006_v2  ;;  %v1057_v17 = vmax.f32 %v994_v60, 0.0 }
 0x146   : > { %v1054_v27 = vmax.f32 %v1020_v6, 0.0  ;;  %1065 = vst [vmem:[%s2418_s26 + $0x28] sm:$0xff] %v1057_v17 }
 0x147   : > { %v1033_v63 = vpop.f32.mrf.mxu2 }
 0x148   : > { %1062 = vst [vmem:[%s2418_s26 + $0x10] sm:$0xff] %v1054_v27  ;;  %v1034_v10 = vadd.f32 %v1033_v63, %v615_v32 }
 0x149   : > { %v1047_v52 = vpop.f32.mrf.mxu3  ;;  %v1007_v35 = vpop.f32.mrf.mxu0 }
 0x14a   : > { %v1008_v13 = vadd.f32 %v1007_v35, %v614_v50  ;;  %v1048_v54 = vadd.f32 %v1047_v52, %v1034_v10 }
 0x14b   : > { %v1021_v39 = vpop.f32.mrf.mxu1 }
 0x14c   : > { %v1022_v31 = vadd.f32 %v1021_v39, %v1008_v13  ;;  %v1055_v14 = vmax.f32 %v1048_v54, 0.0 }
 0x14e   : > { %v1058_v18 = vmax.f32 %v1022_v31, 0.0  ;;  %1063 = vst [vmem:[%s2418_s26 + $0x18] sm:$0xff] %v1055_v14 }
 0x14f   : > { %v1035_v57 = vpop.f32.mrf.mxu2 }
 0x150   : > { %1066 = vst [vmem:[%s2418_s26 + $0x30] sm:$0xff] %v1058_v18  ;;  %v1036_v43 = vadd.f32 %v1035_v57, %v615_v32 }
 0x151   : > { %v1049_v30 = vpop.f32.mrf.mxu3 }
 0x152   : > { %v1050_v22 = vadd.f32 %v1049_v30, %v1036_v43 }
 0x154   : > { %v1059_v29 = vmax.f32 %v1050_v22, 0.0 }
 0x156   : > { %1067 = vst [vmem:[%s2418_s26 + $0x38] sm:$0xff] %v1059_v29 }
 0x157 PF: > { %s15_s20 = sadd.s32 1, %s1539_s20   ;;  %s2447_s18 = smov %s1535_s19 }
 0x158   : > { %p12_p5 = scmp.ge.s32.totalorder %s15_s20, 4   ;;  %s2448_s19 = smov %s2450_s21 }
 0x15a   :  { %14 = sbr.rel (!%p12_p5) target bundleno = 2 (0x2), region = 71 }

</bundles_post_ra>
